<compile_context>
chip_gen: v7x
topology: tpu7x:2x2x1
jax: 0.10.0
libtpu: 0.0.40
codegen_flags: <defaults>
</compile_context>

<pallas_src>
import functools
import math

import jax
import jax.numpy as jnp
from jax.experimental import pallas as pl
from jax.experimental.pallas import tpu as pltpu

MAX_ACTION = 0.5235988


def _round_up(x, m):
    return (x + m - 1) // m * m


def _actor_critic_kernel(x_ref, w1_ref, b1_ref, w2_ref, b2_ref,
                         wh_ref, bh_ref, out_ref, *, action_dim):
    x = x_ref[...].astype(jnp.bfloat16)                                  # (TB, S)

    # fc1 + relu  (bf16 operands, f32 accumulation; elementwise stays f32)
    h1 = jnp.dot(x, w1_ref[...], preferred_element_type=jnp.float32) + b1_ref[...]
    h1 = jnp.maximum(h1, 0.0)                                            # (TB, Hp)

    # fc2 + relu
    h2 = jnp.dot(h1.astype(jnp.bfloat16), w2_ref[...],
                 preferred_element_type=jnp.float32) + b2_ref[...]
    h2 = jnp.maximum(h2, 0.0)                                            # (TB, Hp)

    # fused heads (narrow 8-lane slab): cols [0, A) = mean, col A = value, rest 0.
    heads = jnp.dot(h2.astype(jnp.bfloat16), wh_ref[...],
                    preferred_element_type=jnp.float32) + bh_ref[...]    # (TB, NH)

    col = jax.lax.broadcasted_iota(jnp.int32, heads.shape, 1)
    out_ref[...] = jnp.where(col < action_dim,
                             jnp.tanh(heads) * MAX_ACTION,   # mean columns
                             heads)                          # value column (+ zero pad)


def prepare_params(params):
    """Pad hidden to 128 lanes, fuse mean+value heads (8-lane slab), bf16 weights."""
    w1, b1 = params["w1"], params["b1"]
    w2, b2 = params["w2"], params["b2"]
    wm, bm = params["wm"], params["bm"]
    wv, bv = params["wv"], params["bv"]
    S, H = w1.shape
    A = wm.shape[1]
    Hp = _round_up(H, 128)             # hidden padded to lane width
    NH = _round_up(A + 1, 8)           # fused head lanes: [mean | value | pad], sublane-aligned

    w1p = jnp.zeros((S, Hp), jnp.float32).at[:, :H].set(w1).astype(jnp.bfloat16)
    b1p = jnp.zeros((1, Hp), jnp.float32).at[0, :H].set(b1)
    w2p = jnp.zeros((Hp, Hp), jnp.float32).at[:H, :H].set(w2).astype(jnp.bfloat16)
    b2p = jnp.zeros((1, Hp), jnp.float32).at[0, :H].set(b2)
    whp = (jnp.zeros((Hp, NH), jnp.float32)
           .at[:H, :A].set(wm)
           .at[:H, A].set(wv[:, 0])
           .astype(jnp.bfloat16))
    bhp = (jnp.zeros((1, NH), jnp.float32)
           .at[0, :A].set(bm)
           .at[0, A].set(bv[0]))

    return {"w1": w1p, "b1": b1p, "w2": w2p, "b2": b2p, "wh": whp, "bh": bhp,
            "log_std": params["log_std"],
            "action_dim": A, "hidden_pad": Hp, "head_lanes": NH}


def _compute_tiles(B, tile_b):
    """n_tiles first, then tile size -> ragged batches pad at most ~8 rows/tile."""
    n_tiles = pl.cdiv(B, tile_b)
    if B >= 16:                      # enough rows for two sublane-aligned tiles
        n_tiles = max(n_tiles, 2)    # v7x megacore: give both TensorCores work
        n_tiles += n_tiles % 2       # balanced split across 2 cores
    tile = _round_up(pl.cdiv(B, n_tiles), 8)
    n_tiles = pl.cdiv(B, tile)       # drop tiles that became pure padding
    return tile, n_tiles


def actor_critic_forward(state, prep, *, tile_b=4096):
    """state: (B, state_dim) f32.  Returns (mean, std, value)."""
    B, S = state.shape
    A = prep["action_dim"]
    Hp = prep["hidden_pad"]
    NH = prep["head_lanes"]

    TILE_B, n_tiles = _compute_tiles(B, tile_b)
    B_pad = n_tiles * TILE_B
    if B_pad != B:
        state = jnp.pad(state, ((0, B_pad - B), (0, 0)))

    kernel = functools.partial(_actor_critic_kernel, action_dim=A)

    flops = 2 * B_pad * (S * Hp + Hp * Hp + Hp * NH)
    bytes_accessed = (B_pad * S * 4                                   # state in
                      + (prep["w1"].size + prep["w2"].size + prep["wh"].size) * 2
                      + (prep["b1"].size + prep["b2"].size + prep["bh"].size) * 4
                      + B_pad * NH * 4)                               # narrow output slab

    out = pl.pallas_call(
        kernel,
        out_shape=jax.ShapeDtypeStruct((B_pad, NH), jnp.float32),
        grid=(n_tiles,),
        in_specs=[
            pl.BlockSpec((TILE_B, S), lambda i: (i, 0)),     # state: tiled over batch
            pl.BlockSpec((S, Hp), lambda i: (0, 0)),         # weights/biases resident
            pl.BlockSpec((1, Hp), lambda i: (0, 0)),
            pl.BlockSpec((Hp, Hp), lambda i: (0, 0)),
            pl.BlockSpec((1, Hp), lambda i: (0, 0)),
            pl.BlockSpec((Hp, NH), lambda i: (0, 0)),
            pl.BlockSpec((1, NH), lambda i: (0, 0)),
        ],
        out_specs=pl.BlockSpec((TILE_B, NH), lambda i: (i, 0)),
        compiler_params=pltpu.CompilerParams(
            dimension_semantics=("parallel",),               # megacore on v7x
            vmem_limit_bytes=32 * 1024 * 1024),
        cost_estimate=pl.CostEstimate(flops=flops,
                                      transcendentals=B_pad * NH,
                                      bytes_accessed=bytes_accessed),
    )(state, prep["w1"], prep["b1"], prep["w2"], prep["b2"],
      prep["wh"], prep["bh"])

    mean = out[:B, :A]
    value = out[:B, A:A + 1]
    # Parameter-only (batch-independent): computed once in plain JAX, not per grid step.
    std = jnp.exp(jnp.clip(prep["log_std"], -20.0, 2.0))
    return mean, std, value


def init_params(key, state_dim, action_dim, hidden_size=64):
    """Deterministic init mimicking nn.Linear's U(-1/sqrt(fan_in), 1/sqrt(fan_in))."""
    def linear(k, fan_in, fan_out):
        kw, kb = jax.random.split(k)
        bound = 1.0 / math.sqrt(fan_in)
        w = jax.random.uniform(kw, (fan_in, fan_out), jnp.float32, -bound, bound)
        b = jax.random.uniform(kb, (fan_out,), jnp.float32, -bound, bound)
        return w, b

    k1, k2, k3, k4 = jax.random.split(key, 4)
    w1, b1 = linear(k1, state_dim, hidden_size)
    w2, b2 = linear(k2, hidden_size, hidden_size)
    wm, bm = linear(k3, hidden_size, action_dim)
    wv, bv = linear(k4, hidden_size, 1)
    log_std = jnp.zeros((action_dim,), jnp.float32)   # nn.Parameter(torch.zeros(A))
    return {"w1": w1, "b1": b1, "w2": w2, "b2": b2,
            "wm": wm, "bm": bm, "wv": wv, "bv": bv, "log_std": log_std}


def reference_forward(state, p):
    h1 = jnp.maximum(state @ p["w1"] + p["b1"], 0.0)
    h2 = jnp.maximum(h1 @ p["w2"] + p["b2"], 0.0)
    mean = jnp.tanh(h2 @ p["wm"] + p["bm"]) * MAX_ACTION
    std = jnp.exp(jnp.clip(p["log_std"], -20.0, 2.0))
    value = h2 @ p["wv"] + p["bv"]
    return mean, std, value


if __name__ == "__main__":
    key = jax.random.PRNGKey(0)
    k_params, k_state = jax.random.split(key)

    # Small shapes consistent with the module's forward.
    batch, state_dim, action_dim, hidden = 2, 8, 4, 64

    params = init_params(k_params, state_dim, action_dim, hidden)
    state = jax.random.normal(k_state, (batch, state_dim), jnp.float32)

    prep = prepare_params(params)
    mean, std, value = actor_critic_forward(state, prep)
    jax.block_until_ready((mean, std, value))

    # Sanity check against a plain-JAX f32 reference.
    ref_mean, ref_std, ref_value = reference_forward(state, params)
    assert mean.shape == (batch, action_dim)
    assert std.shape == (action_dim,)
    assert value.shape == (batch, 1)
    # bf16 matmul operands -> ~1e-2 level tolerance vs the exact f32 reference.
    assert jnp.allclose(mean, ref_mean, atol=2e-2, rtol=2e-2)
    assert jnp.allclose(std, ref_std, atol=1e-6)
    assert jnp.allclose(value, ref_value, atol=2e-2, rtol=2e-2)

    # Also exercise a ragged / multi-tile batch to cover the grid path.
    big_state = jax.random.normal(k_state, (1031, state_dim), jnp.float32)
    bm_, bs_, bv_ = actor_critic_forward(big_state, prep, tile_b=512)
    jax.block_until_ready((bm_, bs_, bv_))
    rm_, rs_, rv_ = reference_forward(big_state, params)
    assert bm_.shape == (1031, action_dim) and bv_.shape == (1031, 1)
    assert jnp.allclose(bm_, rm_, atol=2e-2, rtol=2e-2)
    assert jnp.allclose(bv_, rv_, atol=2e-2, rtol=2e-2)

    print("KERNEL_OK")
</pallas_src>

<mosaic_0001>
module attributes {stable_mosaic.version = 11 : i64} {
  func.func @_actor_critic_kernel(%arg0: i32, %arg1: memref<8x8xf32, #tpu.memory_space<vmem>>, %arg2: memref<8x128xbf16, #tpu.memory_space<vmem>>, %arg3: memref<1x128xf32, #tpu.memory_space<vmem>>, %arg4: memref<128x128xbf16, #tpu.memory_space<vmem>>, %arg5: memref<1x128xf32, #tpu.memory_space<vmem>>, %arg6: memref<128x8xbf16, #tpu.memory_space<vmem>>, %arg7: memref<1x8xf32, #tpu.memory_space<vmem>>, %arg8: memref<8x8xf32, #tpu.memory_space<vmem>>) attributes {dimension_semantics = [#tpu.dimension_semantics<parallel>], iteration_bounds = array<i64: 1>, scalar_prefetch = 0 : i64, scratch_operands = 0 : i64, tpu.core_type = #tpu.core_type<tc>, window_params = [{transform_indices = @transform_0, window_bounds = array<i64: 8, 8>}, {pipeline_mode = #tpu.pipeline_mode<synchronous>, transform_indices = @transform_1, window_bounds = array<i64: 8, 128>}, {pipeline_mode = #tpu.pipeline_mode<synchronous>, transform_indices = @transform_2, window_bounds = array<i64: 1, 128>}, {pipeline_mode = #tpu.pipeline_mode<synchronous>, transform_indices = @transform_3, window_bounds = array<i64: 128, 128>}, {pipeline_mode = #tpu.pipeline_mode<synchronous>, transform_indices = @transform_4, window_bounds = array<i64: 1, 128>}, {pipeline_mode = #tpu.pipeline_mode<synchronous>, transform_indices = @transform_5, window_bounds = array<i64: 128, 8>}, {pipeline_mode = #tpu.pipeline_mode<synchronous>, transform_indices = @transform_6, window_bounds = array<i64: 1, 8>}, {transform_indices = @transform_7, window_bounds = array<i64: 8, 8>}]} {
    %c0 = arith.constant 0 : index
    %c0_0 = arith.constant 0 : index
    %0 = vector.load %arg1[%c0, %c0_0] : memref<8x8xf32, #tpu.memory_space<vmem>>, vector<8x8xf32>
    %1 = arith.truncf %0 : vector<8x8xf32> to vector<8x8xbf16>
    %c0_1 = arith.constant 0 : index
    %c0_2 = arith.constant 0 : index
    %2 = vector.load %arg2[%c0_1, %c0_2] : memref<8x128xbf16, #tpu.memory_space<vmem>>, vector<8x128xbf16>
    %cst = arith.constant dense<0.000000e+00> : vector<8x128xf32>
    %3 = tpu.matmul %1, %2, %cst {dimension_numbers = #tpu.dot_dimension_numbers<[1], [0], [0], [1], [0, 0, 1, 1], [], []>} : vector<8x8xbf16>, vector<8x128xbf16>, vector<8x128xf32> -> vector<8x128xf32>
    %c0_3 = arith.constant 0 : index
    %c0_4 = arith.constant 0 : index
    %4 = vector.load %arg3[%c0_3, %c0_4] : memref<1x128xf32, #tpu.memory_space<vmem>>, vector<1x128xf32>
    %5 = vector.broadcast %4 : vector<1x128xf32> to vector<8x128xf32>
    %6 = arith.addf %3, %5 : vector<8x128xf32>
    %cst_5 = arith.constant 0.000000e+00 : f32
    %7 = vector.broadcast %cst_5 : f32 to vector<8x128xf32>
    %8 = arith.maximumf %6, %7 : vector<8x128xf32>
    %9 = arith.truncf %8 : vector<8x128xf32> to vector<8x128xbf16>
    %c0_6 = arith.constant 0 : index
    %c0_7 = arith.constant 0 : index
    %10 = vector.load %arg4[%c0_6, %c0_7] : memref<128x128xbf16, #tpu.memory_space<vmem>>, vector<128x128xbf16>
    %cst_8 = arith.constant dense<0.000000e+00> : vector<8x128xf32>
    %11 = tpu.matmul %9, %10, %cst_8 {dimension_numbers = #tpu.dot_dimension_numbers<[1], [0], [0], [1], [0, 0, 1, 1], [], []>} : vector<8x128xbf16>, vector<128x128xbf16>, vector<8x128xf32> -> vector<8x128xf32>
    %c0_9 = arith.constant 0 : index
    %c0_10 = arith.constant 0 : index
    %12 = vector.load %arg5[%c0_9, %c0_10] : memref<1x128xf32, #tpu.memory_space<vmem>>, vector<1x128xf32>
    %13 = vector.broadcast %12 : vector<1x128xf32> to vector<8x128xf32>
    %14 = arith.addf %11, %13 : vector<8x128xf32>
    %cst_11 = arith.constant 0.000000e+00 : f32
    %15 = vector.broadcast %cst_11 : f32 to vector<8x128xf32>
    %16 = arith.maximumf %14, %15 : vector<8x128xf32>
    %17 = arith.truncf %16 : vector<8x128xf32> to vector<8x128xbf16>
    %c0_12 = arith.constant 0 : index
    %c0_13 = arith.constant 0 : index
    %18 = vector.load %arg6[%c0_12, %c0_13] : memref<128x8xbf16, #tpu.memory_space<vmem>>, vector<128x8xbf16>
    %cst_14 = arith.constant dense<0.000000e+00> : vector<8x8xf32>
    %19 = tpu.matmul %17, %18, %cst_14 {dimension_numbers = #tpu.dot_dimension_numbers<[1], [0], [0], [1], [0, 0, 1, 1], [], []>} : vector<8x128xbf16>, vector<128x8xbf16>, vector<8x8xf32> -> vector<8x8xf32>
    %c0_15 = arith.constant 0 : index
    %c0_16 = arith.constant 0 : index
    %20 = vector.load %arg7[%c0_15, %c0_16] : memref<1x8xf32, #tpu.memory_space<vmem>>, vector<1x8xf32>
    %21 = vector.broadcast %20 : vector<1x8xf32> to vector<8x8xf32>
    %22 = arith.addf %19, %21 : vector<8x8xf32>
    %23 = tpu.iota {dimensions = array<i32: 1>} : vector<8x8xi32>
    %c4_i32 = arith.constant 4 : i32
    %24 = vector.broadcast %c4_i32 : i32 to vector<8x8xi32>
    %25 = arith.cmpi slt, %23, %24 : vector<8x8xi32>
    %26 = math.tanh %22 : vector<8x8xf32>
    %cst_17 = arith.constant 0.52359879 : f32
    %27 = vector.broadcast %cst_17 : f32 to vector<8x8xf32>
    %28 = arith.mulf %26, %27 : vector<8x8xf32>
    %29 = arith.select %25, %28, %22 : vector<8x8xi1>, vector<8x8xf32>
    %c0_18 = arith.constant 0 : index
    %c0_19 = arith.constant 0 : index
    %30 = vector.load %arg8[%c0_18, %c0_19] : memref<8x8xf32, #tpu.memory_space<vmem>>, vector<8x8xf32>
    tpu.vector_store %arg8[%c0_18, %c0_19], %29 {strides = array<i32>} : memref<8x8xf32, #tpu.memory_space<vmem>>, vector<8x8xf32>,
    return
  }
  func.func @transform_0(%arg0: i32) -> (i32, i32) {
    %c0_i32 = arith.constant 0 : i32
    %c0_i32_0 = arith.constant 0 : i32
    return %arg0, %c0_i32 : i32, i32
  }
  func.func @transform_1(%arg0: i32) -> (i32, i32) {
    %c0_i32 = arith.constant 0 : i32
    %c0_i32_0 = arith.constant 0 : i32
    %c0_i32_1 = arith.constant 0 : i32
    return %c0_i32, %c0_i32_0 : i32, i32
  }
  func.func @transform_2(%arg0: i32) -> (i32, i32) {
    %c0_i32 = arith.constant 0 : i32
    %c0_i32_0 = arith.constant 0 : i32
    %c0_i32_1 = arith.constant 0 : i32
    return %c0_i32, %c0_i32_0 : i32, i32
  }
  func.func @transform_3(%arg0: i32) -> (i32, i32) {
    %c0_i32 = arith.constant 0 : i32
    %c0_i32_0 = arith.constant 0 : i32
    %c0_i32_1 = arith.constant 0 : i32
    return %c0_i32, %c0_i32_0 : i32, i32
  }
  func.func @transform_4(%arg0: i32) -> (i32, i32) {
    %c0_i32 = arith.constant 0 : i32
    %c0_i32_0 = arith.constant 0 : i32
    %c0_i32_1 = arith.constant 0 : i32
    return %c0_i32, %c0_i32_0 : i32, i32
  }
  func.func @transform_5(%arg0: i32) -> (i32, i32) {
    %c0_i32 = arith.constant 0 : i32
    %c0_i32_0 = arith.constant 0 : i32
    %c0_i32_1 = arith.constant 0 : i32
    return %c0_i32, %c0_i32_0 : i32, i32
  }
  func.func @transform_6(%arg0: i32) -> (i32, i32) {
    %c0_i32 = arith.constant 0 : i32
    %c0_i32_0 = arith.constant 0 : i32
    %c0_i32_1 = arith.constant 0 : i32
    return %c0_i32, %c0_i32_0 : i32, i32
  }
  func.func @transform_7(%arg0: i32) -> (i32, i32) {
    %c0_i32 = arith.constant 0 : i32
    %c0_i32_0 = arith.constant 0 : i32
    return %arg0, %c0_i32 : i32, i32
  }
}

</mosaic_0001>

<bundles_post_ra>
// kernel: tpu_custom_call.1
= control target key start
LH: loop header
LB: loop body
LE: loop exit
PB: predicated region body
PF: predicated region fallthrough
CT: control target
= control target key end

     0   :  { %vm42_vm0 = vcmask 1043456   ;;  %v464_v2 = vmov 0.0   ;;  %vm465_vm1 = vmmov 0   ;;  %vm38_vm2 = vcmask 64512   ;;  %s604_s0 = inlined_call_operand.vmem [shape: f32[8,8], index: 0, kind: input, shape index: {}]   ;;  %s605_s1 = inlined_call_operand.vmem [shape: bf16[8,128], index: 1, kind: input, shape index: {}]   ;;  %s606_s2 = inlined_call_operand.vmem [shape: f32[1,128], index: 2, kind: input, shape index: {}]   ;;  %s607_s3 = inlined_call_operand.vmem [shape: bf16[128,128], index: 3, kind: input, shape index: {}]   ;;  %s608_s4 = inlined_call_operand.vmem [shape: f32[1,128], index: 4, kind: input, shape index: {}]   ;;  %s609_s5 = inlined_call_operand.vmem [shape: bf16[128,8], index: 5, kind: input, shape index: {}]   ;;  %s610_s6 = inlined_call_operand.vmem [shape: f32[1,8], index: 6, kind: input, shape index: {}]   ;;  %s611_s7 = inlined_call_operand.hbm [shape: f32[8,8], index: 7, kind: output, shape index: {}]  }
   0x1   :  { %v30_v0 = vld [vmem:[%s605_s1] sm:$0xf]  ;;  %373 = vmatprep.subr.bf16.mxu0 %v464_v2  ;;  %375 = vmatprep.mubr.msk.bf16.mxu0 %vm465_vm1, %v464_v2  ;;  %v423_v6 = vld [vmem:[%s607_s3 + $0x8] sm:$0xff]   ;;  %v424_v7 = vld [vmem:[%s607_s3 + $0x10] sm:$0xff]  }
   0x2   :  { %v28_v1 = vld [vmem:[%s604_s0] sm:$0xff]  ;;  %v44_v3 = vsel %vm42_vm0, %v30_v0, 0  ;;  %379 = vmatprep.subr.bf16.mxu1 %v464_v2  ;;  %395 = vmatprep.mubr.msk.bf16.mxu1 %vm465_vm1, %v464_v2  ;;  %v425_v8 = vld [vmem:[%s607_s3 + $0x18] sm:$0xff]  }
   0x3   :  { %v29_v4 = vpack.c.bf16 %v28_v1, %v28_v1  ;;  %374 = vmatpush3.bf16.msra.mxu0 %v44_v3  ;;  %v422_v5 = vld [vmem:[%s607_s3] sm:$0xff]  }
   0x4   :  { %399 = vmatprep.subr.bf16.mxu0 %v464_v2  ;;  %380 = vmatpush3.bf16.msra.mxu1 %v422_v5 }
   0x5   :  { %381 = vmatprep.subr.bf16.mxu1 %v464_v2 }
   0x6   :  { %376 = vmatmul.mubr.msk.bf16.vlgmr.msra.gmra.mrb[0].mxu0 %vm38_vm2, %v29_v4 }
   0x7   :  { %415 = vmatprep.mubr.msk.bf16.mxu0 %vm465_vm1, %v464_v2 }
   0x8   :  { %382 = vmatpush3.bf16.msra.mxu1 %v423_v6 }
   0x9   :  { %383 = vmatprep.subr.bf16.mxu1 %v464_v2 }
   0xc   :  { %384 = vmatpush3.bf16.msra.mxu1 %v424_v7 }
   0xd   :  { %385 = vmatprep.subr.bf16.mxu1 %v464_v2 }
   0xe   :  { %12 = vsyncpa [#allocation3], 0  ;;  %v426_v9 = vld [vmem:[%s607_s3 + $0x20] sm:$0xff]   ;;  %v427_v10 = vld [vmem:[%s607_s3 + $0x28] sm:$0xff]   ;;  %v312_v43 = vlaneseq }
   0xf   :  { %v428_v11 = vld [vmem:[%s607_s3 + $0x30] sm:$0xff]   ;;  %v429_v12 = vld [vmem:[%s607_s3 + $0x38] sm:$0xff]   ;;  %v430_v13 = vld [vmem:[%s609_s5] sm:$0xff]  }
  0x10   :  { %386 = vmatpush3.bf16.msra.mxu1 %v425_v8  ;;  %400 = vmatpush3.bf16.msra.mxu0 %v430_v13  ;;  %v431_v14 = vld [vmem:[%s609_s5 + $0x8] sm:$0xff]   ;;  %v432_v15 = vld [vmem:[%s609_s5 + $0x10] sm:$0xff]   ;;  %v433_v16 = vld [vmem:[%s609_s5 + $0x18] sm:$0xff]   ;;  %v313_v44 = vand.u32 127, %v312_v43 }
  0x11   :  { %387 = vmatprep.subr.bf16.mxu1 %v464_v2  ;;  %401 = vmatprep.subr.bf16.mxu0 %v464_v2  ;;  %v434_v17 = vld [vmem:[%s609_s5 + $0x20] sm:$0xff]   ;;  %v435_v18 = vld [vmem:[%s609_s5 + $0x28] sm:$0xff]   ;;  %v436_v27 = vld [vmem:[%s609_s5 + $0x30] sm:$0xff]  }
  0x12   :  { %v333_v19 = vld [vmem:[%s606_s2] ss:$0 sm:$0xff]  ;;  %v437_v28 = vld [vmem:[%s609_s5 + $0x38] sm:$0xff]   ;;  %vm314_vm3 = vcmp.lt.s32.totalorder %v313_v44, 4 }
  0x13   :  { %v335_v29 = vld [vmem:[%s608_s4] ss:$0 sm:$0xff]  ;;  %s466_s4 = smov [#allocation2]  }
  0x14   :  { %388 = vmatpush3.bf16.msra.mxu1 %v426_v9  ;;  %402 = vmatpush3.bf16.msra.mxu0 %v431_v14  ;;  %v344_v37 = vld [vmem:[%s610_s6] ss:$0 sm:$0xff]  ;;  %s325_s5 = sshll.u32 %s466_s4, 4  ;;  %s326_s5 = int_to_ptr.vmem [resolvable:$true] %s325_s5 }
  0x15   :  { %389 = vmatprep.subr.bf16.mxu1 %v464_v2  ;;  %403 = vmatprep.subr.bf16.mxu0 %v464_v2  ;;  %s440_s14 = scalar_lea.vmem %s326_s5, 128  ;;  %p445_p1 = scmp.lt.s32.totalorder %s326_s5, %s326_s5 }
  0x16   :  { %p441_p0 = scmp.ne.s32.totalorder %s326_s5, %s440_s14  ;;  %p446_p2 = scmp.lt.s32.totalorder %s440_s14, %s440_s14 }
  0x18   :  { %390 = vmatpush3.bf16.msra.mxu1 %v427_v10  ;;  %404 = vmatpush3.bf16.msra.mxu0 %v432_v15  ;;  %p447_p3 = por %p446_p2, %p445_p1 }
  0x19   :  { %391 = vmatprep.subr.bf16.mxu1 %v464_v2  ;;  %405 = vmatprep.subr.bf16.mxu0 %v464_v2 }
  0x1a   :  { %p448_p4 = pnand %p447_p3, %p441_p0 }
  0x1c   :  { %392 = vmatpush3.bf16.msra.mxu1 %v428_v11  ;;  %406 = vmatpush3.bf16.msra.mxu0 %v433_v16 }
  0x1d   :  { %393 = vmatprep.subr.bf16.mxu1 %v464_v2  ;;  %407 = vmatprep.subr.bf16.mxu0 %v464_v2 }
  0x20   :  { %394 = vmatpush3.bf16.msra.mxu1 %v429_v12  ;;  %408 = vmatpush3.bf16.msra.mxu0 %v434_v17 }
  0x21   :  { %409 = vmatprep.subr.bf16.mxu0 %v464_v2 }
  0x24   :  { %410 = vmatpush3.bf16.msra.mxu0 %v435_v18 }
  0x25   :  { %411 = vmatprep.subr.bf16.mxu0 %v464_v2 }
  0x28   :  { %412 = vmatpush3.bf16.msra.mxu0 %v436_v27 }
  0x29   :  { %413 = vmatprep.subr.bf16.mxu0 %v464_v2 }
  0x2c   :  { %414 = vmatpush3.bf16.msra.mxu0 %v437_v28 }
  0xd9   :  { %v80_v20 = vpop.f32.mrb[0].mxu0 }
  0xda   :  { %v81_v21 = vadd.f32 %v333_v19, %v80_v20  ;;  %v377_v22 = vpop.f32.mrb[1].mxu0 }
  0xdb   :  { %v83_v23 = vpop.f32.mrb[2].mxu0 }
  0xdc   :  { %v86_v24 = vmax.f32 %v81_v21, 0.0  ;;  %v378_v25 = vpop.f32.mrb[3].mxu0 }
  0xde   :  { %v87_v26 = vpack.c.bf16 %v86_v24, %v86_v24 }
  0xe0   :  { %396 = vmatmul.mubr.bf16.vlgmr.msra.gmra.mrb[0].mxu1 %v87_v26 }
 0x1b3   :  { %v193_v30 = vpop.f32.mrb[0].mxu1 }
 0x1b4   :  { %v194_v31 = vadd.f32 %v335_v29, %v193_v30  ;;  %v397_v32 = vpop.f32.mrb[1].mxu1 }
 0x1b5   :  { %v196_v33 = vpop.f32.mrb[2].mxu1 }
 0x1b6   :  { %v199_v34 = vmax.f32 %v194_v31, 0.0  ;;  %v398_v35 = vpop.f32.mrb[3].mxu1 }
 0x1b8   :  { %v200_v36 = vpack.c.bf16 %v199_v34, %v199_v34 }
 0x1ba   :  { %416 = vmatmul.mubr.bf16.vlgmr.msra.gmra.mrb[4].mxu0 %v200_v36 }
 0x28d   :  { %v306_v38 = vpop.f32.mrb[4].mxu0 }
 0x28e   :  { %v307_v39 = vadd.f32 %v344_v37, %v306_v38  ;;  %v417_v40 = vpop.f32.mrb[5].mxu0 }
 0x28f   :  { %v309_v41 = vpop.f32.mrb[6].mxu0 }
 0x290   :  { %438 = vtanh.f32 %v307_v39  ;;  %v418_v42 = vpop.f32.mrb[7].mxu0 }
 0x29a   :  { %v439_v45 = vpop.eup %438 }
 0x29b   :  { %v316_v46 = vmul.f32 0.5235988, %v439_v45 }
 0x29d   :  { %v317_v47 = vsel %vm314_vm3, %v316_v46, %v307_v39 }
 0x29e   :  { %318 = vst.msk [vmem:[#allocation2] sm:$0xff] %vm38_vm2, %v317_v47 }
 0x29f   :  { %451 = shalt.err (!%p448_p4)
}
 0x2a0   :  { %s452_s16 = scalar_lea.hbm %s611_s7, 128 }
 0x2a1   :  { %p453_p5 = scmp.ne.s32.totalorder %s611_s7, %s452_s16  ;;  %p456_p6 = scmp.lt.u32.totalorder %s452_s16, %s611_s7 }
 0x2a3   :  { %p458_p7 = pnand %p456_p6, %p453_p5 }
 0x2a5   :  { %461 = shalt.err (!%p458_p7)
}
 0x2a6   :  { %328 = dma.vmem_to_hbm [thread:$0]  %s326_s5, 128, %s611_s7, [#allocation3]  }
 0x2a7   :  { %462 = dma.done.wait [#allocation3], 128  }
 0x2a8   :  { %463 = vsyncadd [#allocation3], 4294967168 }
 0x2a9   :  { %332 = vsyncpa [#allocation3], 1 }

</bundles_post_ra>
